<compile_context>
chip_gen: v7x
topology: tpu7x:2x2x1
jax: 0.10.0
libtpu: 0.0.40
codegen_flags: <defaults>
</compile_context>

<pallas_src>
import math

import jax
import jax.numpy as jnp
from jax import lax
from jax.experimental import pallas as pl
from jax.experimental.pallas import tpu as pltpu

SEG = 128  # lane-aligned segment width for the activation slab / packed outputs

_VMEM = pl.BlockSpec(memory_space=pltpu.MemorySpace.VMEM)


# ------------------------------- kernel -------------------------------------

def _make_fused_kernel(embedding_dim, generator_dim, data_dim):
    n_blocks = len(generator_dim)

    def kernel(*refs):
        # inputs : x, eps, (w, b, gamma, beta) per residual block, w_final, b_final
        # outputs: out
        # scratch: slab  -- (B, (n_blocks+1)*SEG) f32 activation slab
        x_ref, eps_ref = refs[0], refs[1]
        blk_refs = [refs[2 + 4 * i: 2 + 4 * (i + 1)] for i in range(n_blocks)]
        wf_ref, bf_ref = refs[2 + 4 * n_blocks], refs[3 + 4 * n_blocks]
        out_ref = refs[4 + 4 * n_blocks]
        slab = refs[5 + 4 * n_blocks]

        # Zero the slab once so the padded lanes contribute 0 to later matmuls.
        slab[...] = jnp.zeros_like(slab)
        # Segment 0 holds the original input.
        slab[:, :embedding_dim] = x_ref[...]

        for i, o in enumerate(generator_dim):
            w_ref, b_ref, gamma_ref, beta_ref = blk_refs[i]

            # Everything produced so far, as a lane-dense 128-aligned prefix.
            xin = slab[:, :(i + 1) * SEG]

            # One merged MXU matmul: mu in lanes [0, o), logvar in [SEG, SEG+o).
            h = jnp.dot(xin, w_ref[...], preferred_element_type=jnp.float32) + b_ref[...]
            mu = h[:, :o]
            logvar = h[:, SEG:SEG + o]

            # Reparameterize: mu + eps * exp(0.5 * logvar)
            eps = eps_ref[:, i * SEG: i * SEG + o]
            z = mu + eps * jnp.exp(0.5 * logvar)

            # BatchNorm1d (training mode: biased batch stats, eps=1e-5) + ReLU.
            mean = jnp.mean(z, axis=0, keepdims=True)
            var = jnp.mean(jnp.square(z - mean), axis=0, keepdims=True)
            y = gamma_ref[...] * ((z - mean) * lax.rsqrt(var + 1e-5)) + beta_ref[...]
            y = jnp.maximum(y, 0.0)

            # "torch.cat([out, input_], 1)" == append y as the next slab segment
            # (tile-aligned offset, the ordering is folded into the packed weights).
            slab[:, (i + 1) * SEG: (i + 1) * SEG + o] = y

        # Final layer: merged mu/logvar matmul over the whole slab + reparam.
        h = jnp.dot(slab[...], wf_ref[...], preferred_element_type=jnp.float32) + bf_ref[...]
        mu = h[:, :data_dim]
        logvar = h[:, SEG:SEG + data_dim]
        eps = eps_ref[:, n_blocks * SEG: n_blocks * SEG + data_dim]
        out_ref[...] = mu + eps * jnp.exp(0.5 * logvar)

    return kernel


def make_bayesian_generator(embedding_dim, generator_dim, data_dim, batch):
    """Returns a jitted forward(packed_params, x, noise_key) -> (batch, data_dim)."""
    assert embedding_dim <= SEG and data_dim <= SEG
    assert all(o <= SEG for o in generator_dim)
    n_blocks = len(generator_dim)
    n_seg = n_blocks + 1
    n_inputs = 2 + 4 * n_blocks + 2

    call = pl.pallas_call(
        _make_fused_kernel(embedding_dim, generator_dim, data_dim),
        out_shape=jax.ShapeDtypeStruct((batch, data_dim), jnp.float32),
        in_specs=[_VMEM] * n_inputs,
        out_specs=_VMEM,
        scratch_shapes=[pltpu.VMEM((batch, n_seg * SEG), jnp.float32)],
    )

    @jax.jit
    def forward(packed_params, x, noise_key):
        # All reparameterization noise in one lane-dense array (one DMA).
        eps = jax.random.normal(noise_key, (batch, n_seg * SEG), jnp.float32)
        args = [x, eps]
        for blk in packed_params["blocks"]:
            args += [blk["w"], blk["b"], blk["gamma"], blk["beta"]]
        args += [packed_params["final_w"], packed_params["final_b"]]
        return call(*args)

    return forward


# -------------------------- parameter setup ---------------------------------

def _init_linear(key, in_dim, out_dim):
    """PyTorch nn.Linear default init; weight stored transposed as [in, out]."""
    k = 1.0 / math.sqrt(in_dim)
    kw, kb = jax.random.split(key)
    w = jax.random.uniform(kw, (in_dim, out_dim), jnp.float32, -k, k)
    b = jax.random.uniform(kb, (1, out_dim), jnp.float32, -k, k)
    return w, b


def init_bayesian_generator(key, embedding_dim, generator_dim, data_dim):
    """Reference-layout parameters (unpadded, weights as [in, out])."""
    params = {"residuals": []}
    dim = embedding_dim
    for o in generator_dim:
        key, k1, k2 = jax.random.split(key, 3)
        w_mu, b_mu = _init_linear(k1, dim, o)
        w_lv, b_lv = _init_linear(k2, dim, o)
        params["residuals"].append({
            "w_mu": w_mu, "b_mu": b_mu, "w_lv": w_lv, "b_lv": b_lv,
            "gamma": jnp.ones((1, o), jnp.float32),
            "beta": jnp.zeros((1, o), jnp.float32),
        })
        dim += o
    key, k1, k2 = jax.random.split(key, 3)
    w_mu, b_mu = _init_linear(k1, dim, data_dim)
    w_lv, b_lv = _init_linear(k2, dim, data_dim)
    params["final"] = {"w_mu": w_mu, "b_mu": b_mu, "w_lv": w_lv, "b_lv": b_lv}
    return params


def _pack_dual_linear(w_mu, w_lv, b_mu, b_lv, seg_widths):
    """Merge mu/logvar linears into one [K_pad, 2*SEG] matrix whose input rows
    line up with the 128-aligned slab segments; mu columns start at lane 0,
    logvar columns at lane SEG. Padding rows/cols are exactly zero."""
    o = w_mu.shape[1]
    k_pad = len(seg_widths) * SEG
    w = jnp.zeros((k_pad, 2 * SEG), jnp.float32)
    b = jnp.zeros((1, 2 * SEG), jnp.float32)
    row = 0
    for s, width in enumerate(seg_widths):
        w = w.at[s * SEG: s * SEG + width, 0:o].set(w_mu[row:row + width])
        w = w.at[s * SEG: s * SEG + width, SEG:SEG + o].set(w_lv[row:row + width])
        row += width
    b = b.at[:, 0:o].set(b_mu)
    b = b.at[:, SEG:SEG + o].set(b_lv)
    return w, b


def pack_params(params, embedding_dim, generator_dim):
    """Pack reference-layout parameters into the kernel's padded layout (once)."""
    packed = {"blocks": []}
    widths = [embedding_dim]
    for i, o in enumerate(generator_dim):
        p = params["residuals"][i]
        w, b = _pack_dual_linear(p["w_mu"], p["w_lv"], p["b_mu"], p["b_lv"], widths)
        packed["blocks"].append({"w": w, "b": b, "gamma": p["gamma"], "beta": p["beta"]})
        widths.append(o)
    f = params["final"]
    w, b = _pack_dual_linear(f["w_mu"], f["w_lv"], f["b_mu"], f["b_lv"], widths)
    packed["final_w"], packed["final_b"] = w, b
    return packed


# --------------------------- pure-JAX reference ------------------------------

def reference_forward(params, x, eps_all, generator_dim, data_dim):
    """Pure-JAX forward using the same parameters and eps stream as the kernel."""
    parts = [x]
    for i, (o, p) in enumerate(zip(generator_dim, params["residuals"])):
        xin = jnp.concatenate(parts, axis=1)
        mu = xin @ p["w_mu"] + p["b_mu"]
        logvar = xin @ p["w_lv"] + p["b_lv"]
        eps = eps_all[:, i * SEG: i * SEG + o]
        z = mu + eps * jnp.exp(0.5 * logvar)
        mean = jnp.mean(z, axis=0, keepdims=True)
        var = jnp.mean((z - mean) ** 2, axis=0, keepdims=True)
        y = jnp.maximum(p["gamma"] * (z - mean) * lax.rsqrt(var + 1e-5) + p["beta"], 0.0)
        parts.append(y)
    xin = jnp.concatenate(parts, axis=1)
    f = params["final"]
    mu = xin @ f["w_mu"] + f["b_mu"]
    logvar = xin @ f["w_lv"] + f["b_lv"]
    n = len(generator_dim)
    eps = eps_all[:, n * SEG: n * SEG + data_dim]
    return mu + eps * jnp.exp(0.5 * logvar)


# --------------------------------- main --------------------------------------

if __name__ == "__main__":
    embedding_dim = 32
    generator_dim = (32, 32)
    data_dim = 16
    batch = 8

    key = jax.random.PRNGKey(0)
    key_params, key_input, key_noise = jax.random.split(key, 3)

    params = init_bayesian_generator(key_params, embedding_dim, generator_dim, data_dim)
    packed = pack_params(params, embedding_dim, generator_dim)
    x = jax.random.normal(key_input, (batch, embedding_dim), jnp.float32)

    forward = make_bayesian_generator(embedding_dim, generator_dim, data_dim, batch)
    out = jax.block_until_ready(forward(packed, x, key_noise))

    assert out.shape == (batch, data_dim), out.shape
    assert bool(jnp.all(jnp.isfinite(out)))

    # Cross-check against a pure-JAX reference using the same eps stream.
    eps_all = jax.random.normal(
        key_noise, (batch, (len(generator_dim) + 1) * SEG), jnp.float32)
    ref = reference_forward(params, x, eps_all, generator_dim, data_dim)
    max_diff = float(jnp.max(jnp.abs(out - ref)))
    assert jnp.allclose(out, ref, rtol=5e-2, atol=5e-2), max_diff

    print("KERNEL_OK")
</pallas_src>

<mosaic_0001>
module attributes {stable_mosaic.version = 11 : i64} {
  func.func @kernel(%arg0: memref<8x32xf32, #tpu.memory_space<vmem>>, %arg1: memref<8x384xf32, #tpu.memory_space<vmem>>, %arg2: memref<128x256xf32, #tpu.memory_space<vmem>>, %arg3: memref<1x256xf32, #tpu.memory_space<vmem>>, %arg4: memref<1x32xf32, #tpu.memory_space<vmem>>, %arg5: memref<1x32xf32, #tpu.memory_space<vmem>>, %arg6: memref<256x256xf32, #tpu.memory_space<vmem>>, %arg7: memref<1x256xf32, #tpu.memory_space<vmem>>, %arg8: memref<1x32xf32, #tpu.memory_space<vmem>>, %arg9: memref<1x32xf32, #tpu.memory_space<vmem>>, %arg10: memref<384x256xf32, #tpu.memory_space<vmem>>, %arg11: memref<1x256xf32, #tpu.memory_space<vmem>>, %arg12: memref<8x16xf32, #tpu.memory_space<vmem>>, %arg13: memref<8x384xf32, #tpu.memory_space<vmem>>) attributes {dimension_semantics = [], scalar_prefetch = 0 : i64, scratch_operands = 1 : i64, tpu.core_type = #tpu.core_type<tc>} {
    %cst = arith.constant 0.000000e+00 : f32
    %0 = vector.broadcast %cst : f32 to vector<8x384xf32>
    %c0 = arith.constant 0 : index
    %c0_0 = arith.constant 0 : index
    %1 = vector.load %arg13[%c0, %c0_0] : memref<8x384xf32, #tpu.memory_space<vmem>>, vector<8x384xf32>
    tpu.vector_store %arg13[%c0, %c0_0], %0 {strides = array<i32>} : memref<8x384xf32, #tpu.memory_space<vmem>>, vector<8x384xf32>,
    %c0_1 = arith.constant 0 : index
    %c0_2 = arith.constant 0 : index
    %2 = vector.load %arg0[%c0_1, %c0_2] : memref<8x32xf32, #tpu.memory_space<vmem>>, vector<8x32xf32>
    %c0_3 = arith.constant 0 : index
    %c0_4 = arith.constant 0 : index
    %3 = vector.load %arg13[%c0_3, %c0_4] : memref<8x384xf32, #tpu.memory_space<vmem>>, vector<8x32xf32>
    tpu.vector_store %arg13[%c0_3, %c0_4], %2 {strides = array<i32>} : memref<8x384xf32, #tpu.memory_space<vmem>>, vector<8x32xf32>,
    %c0_5 = arith.constant 0 : index
    %c0_6 = arith.constant 0 : index
    %4 = vector.load %arg13[%c0_5, %c0_6] : memref<8x384xf32, #tpu.memory_space<vmem>>, vector<8x128xf32>
    %c0_7 = arith.constant 0 : index
    %c0_8 = arith.constant 0 : index
    %5 = vector.load %arg2[%c0_7, %c0_8] : memref<128x256xf32, #tpu.memory_space<vmem>>, vector<128x256xf32>
    %cst_9 = arith.constant dense<0.000000e+00> : vector<8x256xf32>
    %6 = tpu.matmul %4, %5, %cst_9 {dimension_numbers = #tpu.dot_dimension_numbers<[1], [0], [0], [1], [0, 0, 1, 1], [], []>} : vector<8x128xf32>, vector<128x256xf32>, vector<8x256xf32> -> vector<8x256xf32>
    %c0_10 = arith.constant 0 : index
    %c0_11 = arith.constant 0 : index
    %7 = vector.load %arg3[%c0_10, %c0_11] : memref<1x256xf32, #tpu.memory_space<vmem>>, vector<1x256xf32>
    %8 = vector.broadcast %7 : vector<1x256xf32> to vector<8x256xf32>
    %9 = arith.addf %6, %8 : vector<8x256xf32>
    %10 = vector.extract_strided_slice %9 {offsets = [0, 0], sizes = [8, 32], strides = [1, 1]} : vector<8x256xf32> to vector<8x32xf32>
    %11 = vector.extract_strided_slice %9 {offsets = [0, 128], sizes = [8, 32], strides = [1, 1]} : vector<8x256xf32> to vector<8x32xf32>
    %c0_12 = arith.constant 0 : index
    %c0_13 = arith.constant 0 : index
    %12 = vector.load %arg1[%c0_12, %c0_13] : memref<8x384xf32, #tpu.memory_space<vmem>>, vector<8x32xf32>
    %cst_14 = arith.constant 5.000000e-01 : f32
    %13 = vector.broadcast %cst_14 : f32 to vector<8x32xf32>
    %14 = arith.mulf %13, %11 : vector<8x32xf32>
    %15 = math.exp %14 : vector<8x32xf32>
    %16 = arith.mulf %12, %15 : vector<8x32xf32>
    %17 = arith.addf %10, %16 : vector<8x32xf32>
    %cst_15 = arith.constant dense<0.000000e+00> : vector<32xf32>
    %18 = vector.multi_reduction <add>, %17, %cst_15 [0] : vector<8x32xf32> to vector<32xf32>
    %19 = vector.shape_cast %18 : vector<32xf32> to vector<1x32xf32>
    %cst_16 = arith.constant 8.000000e+00 : f32
    %20 = vector.broadcast %cst_16 : f32 to vector<1x32xf32>
    %21 = arith.divf %19, %20 : vector<1x32xf32>
    %22 = vector.broadcast %21 : vector<1x32xf32> to vector<8x32xf32>
    %23 = arith.subf %17, %22 : vector<8x32xf32>
    %24 = arith.mulf %23, %23 : vector<8x32xf32>
    %cst_17 = arith.constant dense<0.000000e+00> : vector<32xf32>
    %25 = vector.multi_reduction <add>, %24, %cst_17 [0] : vector<8x32xf32> to vector<32xf32>
    %26 = vector.shape_cast %25 : vector<32xf32> to vector<1x32xf32>
    %cst_18 = arith.constant 8.000000e+00 : f32
    %27 = vector.broadcast %cst_18 : f32 to vector<1x32xf32>
    %28 = arith.divf %26, %27 : vector<1x32xf32>
    %c0_19 = arith.constant 0 : index
    %c0_20 = arith.constant 0 : index
    %29 = vector.load %arg4[%c0_19, %c0_20] : memref<1x32xf32, #tpu.memory_space<vmem>>, vector<1x32xf32>
    %30 = vector.broadcast %21 : vector<1x32xf32> to vector<8x32xf32>
    %31 = arith.subf %17, %30 : vector<8x32xf32>
    %cst_21 = arith.constant 9.99999974E-6 : f32
    %32 = vector.broadcast %cst_21 : f32 to vector<1x32xf32>
    %33 = arith.addf %28, %32 : vector<1x32xf32>
    %34 = math.rsqrt %33 : vector<1x32xf32>
    %35 = vector.broadcast %34 : vector<1x32xf32> to vector<8x32xf32>
    %36 = arith.mulf %31, %35 : vector<8x32xf32>
    %37 = vector.broadcast %29 : vector<1x32xf32> to vector<8x32xf32>
    %38 = arith.mulf %37, %36 : vector<8x32xf32>
    %c0_22 = arith.constant 0 : index
    %c0_23 = arith.constant 0 : index
    %39 = vector.load %arg5[%c0_22, %c0_23] : memref<1x32xf32, #tpu.memory_space<vmem>>, vector<1x32xf32>
    %40 = vector.broadcast %39 : vector<1x32xf32> to vector<8x32xf32>
    %41 = arith.addf %38, %40 : vector<8x32xf32>
    %cst_24 = arith.constant 0.000000e+00 : f32
    %42 = vector.broadcast %cst_24 : f32 to vector<8x32xf32>
    %43 = arith.maximumf %41, %42 : vector<8x32xf32>
    %c0_25 = arith.constant 0 : index
    %c128 = arith.constant 128 : index
    %44 = vector.load %arg13[%c0_25, %c128] : memref<8x384xf32, #tpu.memory_space<vmem>>, vector<8x32xf32>
    tpu.vector_store %arg13[%c0_25, %c128], %43 {strides = array<i32>} : memref<8x384xf32, #tpu.memory_space<vmem>>, vector<8x32xf32>,
    %c0_26 = arith.constant 0 : index
    %c0_27 = arith.constant 0 : index
    %45 = vector.load %arg13[%c0_26, %c0_27] : memref<8x384xf32, #tpu.memory_space<vmem>>, vector<8x256xf32>
    %c0_28 = arith.constant 0 : index
    %c0_29 = arith.constant 0 : index
    %46 = vector.load %arg6[%c0_28, %c0_29] : memref<256x256xf32, #tpu.memory_space<vmem>>, vector<256x256xf32>
    %cst_30 = arith.constant dense<0.000000e+00> : vector<8x256xf32>
    %47 = tpu.matmul %45, %46, %cst_30 {dimension_numbers = #tpu.dot_dimension_numbers<[1], [0], [0], [1], [0, 0, 1, 1], [], []>} : vector<8x256xf32>, vector<256x256xf32>, vector<8x256xf32> -> vector<8x256xf32>
    %c0_31 = arith.constant 0 : index
    %c0_32 = arith.constant 0 : index
    %48 = vector.load %arg7[%c0_31, %c0_32] : memref<1x256xf32, #tpu.memory_space<vmem>>, vector<1x256xf32>
    %49 = vector.broadcast %48 : vector<1x256xf32> to vector<8x256xf32>
    %50 = arith.addf %47, %49 : vector<8x256xf32>
    %51 = vector.extract_strided_slice %50 {offsets = [0, 0], sizes = [8, 32], strides = [1, 1]} : vector<8x256xf32> to vector<8x32xf32>
    %52 = vector.extract_strided_slice %50 {offsets = [0, 128], sizes = [8, 32], strides = [1, 1]} : vector<8x256xf32> to vector<8x32xf32>
    %c0_33 = arith.constant 0 : index
    %c128_34 = arith.constant 128 : index
    %53 = vector.load %arg1[%c0_33, %c128_34] : memref<8x384xf32, #tpu.memory_space<vmem>>, vector<8x32xf32>
    %cst_35 = arith.constant 5.000000e-01 : f32
    %54 = vector.broadcast %cst_35 : f32 to vector<8x32xf32>
    %55 = arith.mulf %54, %52 : vector<8x32xf32>
    %56 = math.exp %55 : vector<8x32xf32>
    %57 = arith.mulf %53, %56 : vector<8x32xf32>
    %58 = arith.addf %51, %57 : vector<8x32xf32>
    %cst_36 = arith.constant dense<0.000000e+00> : vector<32xf32>
    %59 = vector.multi_reduction <add>, %58, %cst_36 [0] : vector<8x32xf32> to vector<32xf32>
    %60 = vector.shape_cast %59 : vector<32xf32> to vector<1x32xf32>
    %cst_37 = arith.constant 8.000000e+00 : f32
    %61 = vector.broadcast %cst_37 : f32 to vector<1x32xf32>
    %62 = arith.divf %60, %61 : vector<1x32xf32>
    %63 = vector.broadcast %62 : vector<1x32xf32> to vector<8x32xf32>
    %64 = arith.subf %58, %63 : vector<8x32xf32>
    %65 = arith.mulf %64, %64 : vector<8x32xf32>
    %cst_38 = arith.constant dense<0.000000e+00> : vector<32xf32>
    %66 = vector.multi_reduction <add>, %65, %cst_38 [0] : vector<8x32xf32> to vector<32xf32>
    %67 = vector.shape_cast %66 : vector<32xf32> to vector<1x32xf32>
    %cst_39 = arith.constant 8.000000e+00 : f32
    %68 = vector.broadcast %cst_39 : f32 to vector<1x32xf32>
    %69 = arith.divf %67, %68 : vector<1x32xf32>
    %c0_40 = arith.constant 0 : index
    %c0_41 = arith.constant 0 : index
    %70 = vector.load %arg8[%c0_40, %c0_41] : memref<1x32xf32, #tpu.memory_space<vmem>>, vector<1x32xf32>
    %71 = vector.broadcast %62 : vector<1x32xf32> to vector<8x32xf32>
    %72 = arith.subf %58, %71 : vector<8x32xf32>
    %cst_42 = arith.constant 9.99999974E-6 : f32
    %73 = vector.broadcast %cst_42 : f32 to vector<1x32xf32>
    %74 = arith.addf %69, %73 : vector<1x32xf32>
    %75 = math.rsqrt %74 : vector<1x32xf32>
    %76 = vector.broadcast %75 : vector<1x32xf32> to vector<8x32xf32>
    %77 = arith.mulf %72, %76 : vector<8x32xf32>
    %78 = vector.broadcast %70 : vector<1x32xf32> to vector<8x32xf32>
    %79 = arith.mulf %78, %77 : vector<8x32xf32>
    %c0_43 = arith.constant 0 : index
    %c0_44 = arith.constant 0 : index
    %80 = vector.load %arg9[%c0_43, %c0_44] : memref<1x32xf32, #tpu.memory_space<vmem>>, vector<1x32xf32>
    %81 = vector.broadcast %80 : vector<1x32xf32> to vector<8x32xf32>
    %82 = arith.addf %79, %81 : vector<8x32xf32>
    %cst_45 = arith.constant 0.000000e+00 : f32
    %83 = vector.broadcast %cst_45 : f32 to vector<8x32xf32>
    %84 = arith.maximumf %82, %83 : vector<8x32xf32>
    %c0_46 = arith.constant 0 : index
    %c256 = arith.constant 256 : index
    %85 = vector.load %arg13[%c0_46, %c256] : memref<8x384xf32, #tpu.memory_space<vmem>>, vector<8x32xf32>
    tpu.vector_store %arg13[%c0_46, %c256], %84 {strides = array<i32>} : memref<8x384xf32, #tpu.memory_space<vmem>>, vector<8x32xf32>,
    %c0_47 = arith.constant 0 : index
    %c0_48 = arith.constant 0 : index
    %86 = vector.load %arg13[%c0_47, %c0_48] : memref<8x384xf32, #tpu.memory_space<vmem>>, vector<8x384xf32>
    %c0_49 = arith.constant 0 : index
    %c0_50 = arith.constant 0 : index
    %87 = vector.load %arg10[%c0_49, %c0_50] : memref<384x256xf32, #tpu.memory_space<vmem>>, vector<384x256xf32>
    %cst_51 = arith.constant dense<0.000000e+00> : vector<8x256xf32>
    %88 = tpu.matmul %86, %87, %cst_51 {dimension_numbers = #tpu.dot_dimension_numbers<[1], [0], [0], [1], [0, 0, 1, 1], [], []>} : vector<8x384xf32>, vector<384x256xf32>, vector<8x256xf32> -> vector<8x256xf32>
    %c0_52 = arith.constant 0 : index
    %c0_53 = arith.constant 0 : index
    %89 = vector.load %arg11[%c0_52, %c0_53] : memref<1x256xf32, #tpu.memory_space<vmem>>, vector<1x256xf32>
    %90 = vector.broadcast %89 : vector<1x256xf32> to vector<8x256xf32>
    %91 = arith.addf %88, %90 : vector<8x256xf32>
    %92 = vector.extract_strided_slice %91 {offsets = [0, 0], sizes = [8, 16], strides = [1, 1]} : vector<8x256xf32> to vector<8x16xf32>
    %93 = vector.extract_strided_slice %91 {offsets = [0, 128], sizes = [8, 16], strides = [1, 1]} : vector<8x256xf32> to vector<8x16xf32>
    %c0_54 = arith.constant 0 : index
    %c256_55 = arith.constant 256 : index
    %94 = vector.load %arg1[%c0_54, %c256_55] : memref<8x384xf32, #tpu.memory_space<vmem>>, vector<8x16xf32>
    %cst_56 = arith.constant 5.000000e-01 : f32
    %95 = vector.broadcast %cst_56 : f32 to vector<8x16xf32>
    %96 = arith.mulf %95, %93 : vector<8x16xf32>
    %97 = math.exp %96 : vector<8x16xf32>
    %98 = arith.mulf %94, %97 : vector<8x16xf32>
    %99 = arith.addf %92, %98 : vector<8x16xf32>
    %c0_57 = arith.constant 0 : index
    %c0_58 = arith.constant 0 : index
    %100 = vector.load %arg12[%c0_57, %c0_58] : memref<8x16xf32, #tpu.memory_space<vmem>>, vector<8x16xf32>
    tpu.vector_store %arg12[%c0_57, %c0_58], %99 {strides = array<i32>} : memref<8x16xf32, #tpu.memory_space<vmem>>, vector<8x16xf32>,
    return
  }
}

</mosaic_0001>

<bundles_post_ra>
// kernel: forward.1
= control target key start
LH: loop header
LB: loop body
LE: loop exit
PB: predicated region body
PF: predicated region fallthrough
CT: control target
= control target key end

     0   :  { %17 = vsyncpa [#allocation4], 0  ;;  %s1229_s0 = inlined_call_operand.vmem [shape: f32[8,32], index: 0, kind: input, shape index: {}]   ;;  %s1230_s1 = inlined_call_operand.vmem [shape: f32[8,384], index: 1, kind: input, shape index: {}]   ;;  %s1231_s2 = inlined_call_operand.hbm [shape: f32[128,256], index: 2, kind: input, shape index: {}]   ;;  %s1232_s3 = inlined_call_operand.vmem [shape: f32[1,256], index: 3, kind: input, shape index: {}]   ;;  %s1233_s4 = inlined_call_operand.vmem [shape: f32[1,32], index: 4, kind: input, shape index: {}]   ;;  %s1234_s5 = inlined_call_operand.vmem [shape: f32[1,32], index: 5, kind: input, shape index: {}]   ;;  %s1235_s6 = inlined_call_operand.hbm [shape: f32[256,256], index: 6, kind: input, shape index: {}]   ;;  %s1236_s7 = inlined_call_operand.vmem [shape: f32[1,256], index: 7, kind: input, shape index: {}]   ;;  %s1237_s8 = inlined_call_operand.vmem [shape: f32[1,32], index: 8, kind: input, shape index: {}]   ;;  %s1238_s9 = inlined_call_operand.vmem [shape: f32[1,32], index: 9, kind: input, shape index: {}]   ;;  %s1239_s10 = inlined_call_operand.hbm [shape: f32[384,256], index: 10, kind: input, shape index: {}]   ;;  %s1240_s11 = inlined_call_operand.vmem [shape: f32[1,256], index: 11, kind: input, shape index: {}]   ;;  %s1241_s12 = inlined_call_operand.hbm [shape: f32[8,16], index: 12, kind: output, shape index: {}]  }
   0x1   :  { %18 = vsyncpa [#allocation7], 0 }
   0x2   :  { %19 = vsyncpa [#allocation5], 0  ;;  %s1033_s21 = smov [#allocation6]   ;;  %s1034_s23 = smov [#allocation3]  }
   0x3   :  { %s47_s22 = sshll.u32 %s1033_s21, 4  ;;  %s29_s24 = sshll.u32 %s1034_s23, 4  ;;  %s48_s22 = int_to_ptr.vmem [resolvable:$true] %s47_s22  ;;  %s1105_s24 = int_to_ptr.vmem [resolvable:$true] %s29_s24 }
   0x4   :  { %s939_s27 = scalar_lea.hbm %s1235_s6, 8192 }
   0x5   :  { %p940_p0 = scmp.ne.s32.totalorder %s1235_s6, %s939_s27  ;;  %p943_p1 = scmp.lt.u32.totalorder %s939_s27, %s1235_s6 }
   0x7   :  { %p945_p2 = pnand %p943_p1, %p940_p0 }
   0x9   :  { %948 = shalt.err (!%p945_p2)
}
   0xa   :  { %s949_s14 = scalar_lea.vmem %s48_s22, 8192  ;;  %p954_p4 = scmp.lt.s32.totalorder %s48_s22, %s48_s22 }
   0xb   :  { %p950_p3 = scmp.ne.s32.totalorder %s48_s22, %s949_s14  ;;  %p955_p5 = scmp.lt.s32.totalorder %s949_s14, %s949_s14 }
   0xd   :  { %p956_p6 = por %p955_p5, %p954_p4 }
   0xf   :  { %p957_p7 = pnand %p956_p6, %p950_p3 }
  0x11   :  { %960 = shalt.err (!%p957_p7)
}
  0x12   :  { %s1035_s15 = smov 256   ;;  %s1036_s16 = smov 16  }
  0x13   :  { %53 = dma.hbm_to_vmem [thread:$0]  %s1235_s6, 8192, %s48_s22, [#allocation7], %s1035_s15, %s1035_s15, %s1036_s16  }
  0x14   :  { %s961_s21 = scalar_lea.hbm %s1231_s2, 4096 }
  0x15   :  { %p962_p8 = scmp.ne.s32.totalorder %s1231_s2, %s961_s21  ;;  %p965_p9 = scmp.lt.u32.totalorder %s961_s21, %s1231_s2 }
  0x17   :  { %p967_p10 = pnand %p965_p9, %p962_p8 }
  0x19   :  { %970 = shalt.err (!%p967_p10)
}
  0x1a   :  { %s971_s28 = scalar_lea.vmem %s1105_s24, 4096  ;;  %p976_p12 = scmp.lt.s32.totalorder %s1105_s24, %s1105_s24 }
  0x1b   :  { %p972_p11 = scmp.ne.s32.totalorder %s1105_s24, %s971_s28  ;;  %p977_p13 = scmp.lt.s32.totalorder %s971_s28, %s971_s28 }
  0x1d   :  { %p978_p0 = por %p977_p13, %p976_p12 }
  0x1f   :  { %p979_p1 = pnand %p978_p0, %p972_p11 }
  0x21   :  { %982 = shalt.err (!%p979_p1)
}
  0x22   :  { %35 = dma.hbm_to_vmem [thread:$0]  %s1231_s2, 4096, %s1105_s24, [#allocation4], %s1035_s15, %s1035_s15, %s1036_s16  }
  0x23   :  { %s1037_s29 = smov [#allocation8]   ;;  %s983_s17 = scalar_lea.hbm %s1239_s10, 12288 }
  0x24   :  { %s65_s30 = sshll.u32 %s1037_s29, 4  ;;  %p984_p2 = scmp.ne.s32.totalorder %s1239_s10, %s983_s17  ;;  %s66_s30 = int_to_ptr.vmem [resolvable:$true] %s65_s30 }
  0x25   :  { %p987_p3 = scmp.lt.u32.totalorder %s983_s17, %s1239_s10 }
  0x27   :  { %p989_p4 = pnand %p987_p3, %p984_p2 }
  0x29   :  { %992 = shalt.err (!%p989_p4)
}
  0x2a   :  { %s993_s23 = scalar_lea.vmem %s66_s30, 12288  ;;  %p998_p6 = scmp.lt.s32.totalorder %s66_s30, %s66_s30 }
  0x2b   :  { %p994_p5 = scmp.ne.s32.totalorder %s66_s30, %s993_s23  ;;  %p999_p7 = scmp.lt.s32.totalorder %s993_s23, %s993_s23 }
  0x2d   :  { %p1000_p8 = por %p999_p7, %p998_p6 }
  0x2f   :  { %p1001_p9 = pnand %p1000_p8, %p994_p5 }
  0x31   :  { %1004 = shalt.err (!%p1001_p9)
}
  0x32   :  { %71 = dma.hbm_to_vmem [thread:$0]  %s1239_s10, 12288, %s66_s30, [#allocation7], %s1035_s15, %s1035_s15, %s1036_s16  }
  0x33   :  { %1027 = dma.done.wait [#allocation4], 4096  }
  0x34   :  { %1028 = vsyncadd [#allocation4], 4294963200 }
  0x35   :  { %1029 = dma.done.wait [#allocation7], 20480  }
  0x36   :  { %1030 = vsyncadd [#allocation7], 4294946816  ;;  %v1038_v0 = vmov 0.0   ;;  %v91_v1 = vld [vmem:[#allocation3 + $0x8] sm:$0xff]  ;;  %v93_v2 = vld [vmem:[#allocation3 + $0x18] sm:$0xff]  ;;  %vm87_vm0 = vcmask 261120  }
  0x37   :  { %83 = vst [vmem:[#allocation2] sm:$0xff] %v1038_v0  ;;  %84 = vst [vmem:[#allocation2 + $0x8] sm:$0xff] %v1038_v0  ;;  %198 = vmatprep.mubr.f32.mxu1 %v1038_v0  ;;  %v90_v3 = vld [vmem:[#allocation3] sm:$0xff]  ;;  %v726_v4 = vpack.c.bf16 %v93_v2, %v91_v1  ;;  %v92_v5 = vld [vmem:[#allocation3 + $0x10] sm:$0xff]  ;;  %s1039_s19 = smov [#allocation9]   ;;  %vm704_vm1 = vcmask 130048  }
  0x38   :  { %85 = vst [vmem:[#allocation2 + $0x10] sm:$0xff] %v1038_v0  ;;  %v95_v6 = vld [vmem:[#allocation3 + $0x28] sm:$0xff]  ;;  %v97_v7 = vld [vmem:[#allocation3 + $0x38] sm:$0xff]  ;;  %v728_v8 = vpack.c.bf16 %v92_v5, %v90_v3  ;;  %v94_v10 = vld [vmem:[#allocation3 + $0x20] sm:$0xff]  ;;  %s712_s20 = sshll.u32 %s1039_s19, 4  ;;  %s713_s20 = int_to_ptr.vmem [resolvable:$true] %s712_s20 }
  0x39   :  { %v730_v9 = vpack.c.bf16 %v97_v7, %v95_v6  ;;  %v96_v11 = vld [vmem:[#allocation3 + $0x30] sm:$0xff]  ;;  %v99_v12 = vld [vmem:[#allocation3 + $0x48] sm:$0xff]  ;;  %727 = vmatprep.subr.bf16.mxu1 %v726_v4  ;;  %v101_v13 = vld [vmem:[#allocation3 + $0x58] sm:$0xff]  ;;  %p1010_p11 = scmp.lt.s32.totalorder %s713_s20, %s713_s20 }
  0x3a   :  { %729 = vmatpush1.bf16.msra.mxu1 %v728_v8  ;;  %v732_v14 = vpack.c.bf16 %v96_v11, %v94_v10  ;;  %v734_v15 = vpack.c.bf16 %v101_v13, %v99_v12  ;;  %v98_v16 = vld [vmem:[#allocation3 + $0x40] sm:$0xff]  ;;  %v100_v17 = vld [vmem:[#allocation3 + $0x50] sm:$0xff]  ;;  %v103_v18 = vld [vmem:[#allocation3 + $0x68] sm:$0xff] }
  0x3b   :  { %731 = vmatprep.subr.bf16.mxu1 %v730_v9  ;;  %v105_v19 = vld [vmem:[#allocation3 + $0x78] sm:$0xff]  ;;  %v736_v20 = vpack.c.bf16 %v100_v17, %v98_v16  ;;  %v102_v22 = vld [vmem:[#allocation3 + $0x60] sm:$0xff]  ;;  %v104_v23 = vld [vmem:[#allocation3 + $0x70] sm:$0xff] }
  0x3c   :  { %v738_v21 = vpack.c.bf16 %v105_v19, %v103_v18  ;;  %v107_v24 = vld [vmem:[#allocation3 + $0x88] sm:$0xff]  ;;  %v109_v25 = vld [vmem:[#allocation3 + $0x98] sm:$0xff]  ;;  %v740_v27 = vpack.c.bf16 %v104_v23, %v102_v22  ;;  %v106_v29 = vld [vmem:[#allocation3 + $0x80] sm:$0xff] }
  0x3d   :  { %v86_v26 = vld [vmem:[%s1229_s0] sm:$0xff]  ;;  %v742_v28 = vpack.c.bf16 %v109_v25, %v107_v24  ;;  %v108_v30 = vld [vmem:[#allocation3 + $0x90] sm:$0xff]  ;;  %v113_v32 = vld [vmem:[#allocation3 + $0xb8] sm:$0xff] }
  0x3e   :  { %733 = vmatpush1.bf16.msra.mxu1 %v732_v14  ;;  %88 = vst.msk [vmem:[#allocation2] sm:$0xff] %vm87_vm0, %v86_v26  ;;  %v111_v31 = vld [vmem:[#allocation3 + $0xa8] sm:$0xff]  ;;  %v744_v33 = vpack.c.bf16 %v108_v30, %v106_v29  ;;  %v110_v35 = vld [vmem:[#allocation3 + $0xa0] sm:$0xff]  ;;  %v112_v36 = vld [vmem:[#allocation3 + $0xb0] sm:$0xff] }
  0x3f   :  { %735 = vmatprep.subr.bf16.mxu1 %v734_v15  ;;  %v746_v34 = vpack.c.bf16 %v113_v32, %v111_v31  ;;  %v115_v37 = vld [vmem:[#allocation3 + $0xc8] sm:$0xff]  ;;  %v117_v38 = vld [vmem:[#allocation3 + $0xd8] sm:$0xff]  ;;  %v748_v39 = vpack.c.bf16 %v112_v36, %v110_v35  ;;  %v114_v41 = vld [vmem:[#allocation3 + $0xc0] sm:$0xff] }
  0x40   :  { %v750_v40 = vpack.c.bf16 %v117_v38, %v115_v37  ;;  %v116_v42 = vld [vmem:[#allocation3 + $0xd0] sm:$0xff]  ;;  %v119_v43 = vld [vmem:[#allocation3 + $0xe8] sm:$0xff]  ;;  %v121_v44 = vld [vmem:[#allocation3 + $0xf8] sm:$0xff] }
  0x41   :  { %v752_v45 = vpack.c.bf16 %v116_v42, %v114_v41  ;;  %v754_v46 = vpack.c.bf16 %v121_v44, %v119_v43  ;;  %v118_v47 = vld [vmem:[#allocation3 + $0xe0] sm:$0xff]  ;;  %v120_v48 = vld [vmem:[#allocation3 + $0xf0] sm:$0xff]  ;;  %v254_v51 = vld [vmem:[#allocation6 + $0x8] sm:$0xff] }
  0x42   :  { %737 = vmatpush1.bf16.msra.mxu1 %v736_v20  ;;  %v756_v49 = vpack.c.bf16 %v120_v48, %v118_v47  ;;  %v256_v52 = vld [vmem:[#allocation6 + $0x18] sm:$0xff]  ;;  %v253_v54 = vld [vmem:[#allocation6] sm:$0xff]  ;;  %v255_v55 = vld [vmem:[#allocation6 + $0x10] sm:$0xff] }
  0x43   :  { %739 = vmatprep.subr.bf16.mxu1 %v738_v21  ;;  %v758_v53 = vpack.c.bf16 %v256_v52, %v254_v51  ;;  %v760_v56 = vpack.c.bf16 %v255_v55, %v253_v54  ;;  %v258_v57 = vld [vmem:[#allocation6 + $0x28] sm:$0xff]  ;;  %v260_v58 = vld [vmem:[#allocation6 + $0x38] sm:$0xff]  ;;  %v257_v60 = vld [vmem:[#allocation6 + $0x20] sm:$0xff] }
  0x44   :  { %v762_v59 = vpack.c.bf16 %v260_v58, %v258_v57  ;;  %v259_v61 = vld [vmem:[#allocation6 + $0x30] sm:$0xff]  ;;  %v262_v63 = vld [vmem:[#allocation6 + $0x48] sm:$0xff]  ;;  %v264_v1 = vld [vmem:[#allocation6 + $0x58] sm:$0xff] }
  0x45   :  { %v1165_v50 = vld [vmem:[#allocation2] sm:$0xff]  ;;  %v764_v62 = vpack.c.bf16 %v259_v61, %v257_v60  ;;  %v766_v2 = vpack.c.bf16 %v264_v1, %v262_v63  ;;  %v261_v3 = vld [vmem:[#allocation6 + $0x40] sm:$0xff]  ;;  %v263_v4 = vld [vmem:[#allocation6 + $0x50] sm:$0xff] }
  0x46   :  { %741 = vmatpush1.bf16.msra.mxu1 %v740_v27  ;;  %v768_v5 = vpack.c.bf16 %v263_v4, %v261_v3  ;;  %v266_v6 = vld [vmem:[#allocation6 + $0x68] sm:$0xff]  ;;  %v268_v7 = vld [vmem:[#allocation6 + $0x78] sm:$0xff]  ;;  %v265_v9 = vld [vmem:[#allocation6 + $0x60] sm:$0xff] }
  0x47   :  { %743 = vmatprep.subr.bf16.mxu1 %v742_v28  ;;  %v770_v8 = vpack.c.bf16 %v268_v7, %v266_v6  ;;  %v267_v10 = vld [vmem:[#allocation6 + $0x70] sm:$0xff]  ;;  %v270_v12 = vld [vmem:[#allocation6 + $0x88] sm:$0xff]  ;;  %v272_v13 = vld [vmem:[#allocation6 + $0x98] sm:$0xff] }
  0x48   :  { %v772_v11 = vpack.c.bf16 %v267_v10, %v265_v9  ;;  %v774_v14 = vpack.c.bf16 %v272_v13, %v270_v12  ;;  %v269_v15 = vld [vmem:[#allocation6 + $0x80] sm:$0xff]  ;;  %v271_v16 = vld [vmem:[#allocation6 + $0x90] sm:$0xff]  ;;  %v274_v18 = vld [vmem:[#allocation6 + $0xa8] sm:$0xff] }
  0x49   :  { %v776_v17 = vpack.c.bf16 %v271_v16, %v269_v15  ;;  %v276_v19 = vld [vmem:[#allocation6 + $0xb8] sm:$0xff]  ;;  %v273_v21 = vld [vmem:[#allocation6 + $0xa0] sm:$0xff]  ;;  %v275_v22 = vld [vmem:[#allocation6 + $0xb0] sm:$0xff] }
  0x4a   :  { %745 = vmatpush1.bf16.msra.mxu1 %v744_v33  ;;  %v778_v20 = vpack.c.bf16 %v276_v19, %v274_v18  ;;  %v780_v23 = vpack.c.bf16 %v275_v22, %v273_v21  ;;  %v278_v24 = vld [vmem:[#allocation6 + $0xc8] sm:$0xff]  ;;  %v280_v25 = vld [vmem:[#allocation6 + $0xd8] sm:$0xff]  ;;  %v277_v27 = vld [vmem:[#allocation6 + $0xc0] sm:$0xff] }
  0x4b   :  { %747 = vmatprep.subr.bf16.mxu1 %v746_v34  ;;  %v782_v26 = vpack.c.bf16 %v280_v25, %v278_v24  ;;  %v279_v28 = vld [vmem:[#allocation6 + $0xd0] sm:$0xff]  ;;  %v282_v30 = vld [vmem:[#allocation6 + $0xe8] sm:$0xff]  ;;  %v284_v31 = vld [vmem:[#allocation6 + $0xf8] sm:$0xff] }
  0x4c   :  { %v784_v29 = vpack.c.bf16 %v279_v28, %v277_v27  ;;  %v786_v32 = vpack.c.bf16 %v284_v31, %v282_v30  ;;  %v281_v33 = vld [vmem:[#allocation6 + $0xe0] sm:$0xff]  ;;  %v283_v34 = vld [vmem:[#allocation6 + $0xf0] sm:$0xff]  ;;  %v286_v36 = vld [vmem:[#allocation6 + $0x108] sm:$0xff] }
  0x4d   :  { %v788_v35 = vpack.c.bf16 %v283_v34, %v281_v33  ;;  %v288_v37 = vld [vmem:[#allocation6 + $0x118] sm:$0xff]  ;;  %v290_v42 = vld [vmem:[#allocation6 + $0x128] sm:$0xff]  ;;  %v293_v52 = vld [vmem:[#allocation6 + $0x140] sm:$0xff] }
  0x4e   :  { %749 = vmatpush1.bf16.msra.mxu1 %v748_v39  ;;  %v790_v38 = vpack.c.bf16 %v288_v37, %v286_v36  ;;  %v285_v39 = vld [vmem:[#allocation6 + $0x100] sm:$0xff]  ;;  %v292_v43 = vld [vmem:[#allocation6 + $0x138] sm:$0xff]  ;;  %v294_v48 = vld [vmem:[#allocation6 + $0x148] sm:$0xff] }
  0x4f   :  { %751 = vmatprep.subr.bf16.mxu1 %v750_v40  ;;  %v287_v40 = vld [vmem:[#allocation6 + $0x110] sm:$0xff]  ;;  %v794_v44 = vpack.c.bf16 %v292_v43, %v290_v42  ;;  %v298_v55 = vld [vmem:[#allocation6 + $0x168] sm:$0xff]  ;;  %v297_v58 = vld [vmem:[#allocation6 + $0x160] sm:$0xff] }
  0x50   :  { %v792_v41 = vpack.c.bf16 %v287_v40, %v285_v39  ;;  %v302_v61 = vld [vmem:[#allocation6 + $0x188] sm:$0xff]  ;;  %v301_v1 = vld [vmem:[#allocation6 + $0x180] sm:$0xff]  ;;  %v455_v28 = vld [vmem:[#allocation8 + $0x38] sm:$0xff]  ;;  %v124_v40 = vlaneseq }
  0x51   :  { %v306_v4 = vld [vmem:[#allocation6 + $0x1a8] sm:$0xff]  ;;  %v305_v7 = vld [vmem:[#allocation6 + $0x1a0] sm:$0xff]  ;;  %v459_v34 = vld [vmem:[#allocation8 + $0x58] sm:$0xff] }
  0x52   :  { %753 = vmatpush1.bf16.msra.mxu1 %v752_v45  ;;  %v289_v45 = vld [vmem:[#allocation6 + $0x120] sm:$0xff]  ;;  %v310_v10 = vld [vmem:[#allocation6 + $0x1c8] sm:$0xff] }
  0x53   :  { %755 = vmatprep.subr.bf16.mxu1 %v754_v46  ;;  %v291_v46 = vld [vmem:[#allocation6 + $0x130] sm:$0xff]  ;;  %v309_v13 = vld [vmem:[#allocation6 + $0x1c0] sm:$0xff]  ;;  %v314_v16 = vld [vmem:[#allocation6 + $0x1e8] sm:$0xff] }
  0x54   :  { %v796_v47 = vpack.c.bf16 %v291_v46, %v289_v45  ;;  %v313_v18 = vld [vmem:[#allocation6 + $0x1e0] sm:$0xff]  ;;  %v449_v22 = vld [vmem:[#allocation8 + $0x8] sm:$0xff] }
  0x55   :  { %v448_v24 = vld [vmem:[#allocation8] sm:$0xff]  ;;  %v453_v27 = vld [vmem:[#allocation8 + $0x28] sm:$0xff] }
  0x56   :  { %757 = vmatpush1.bf16.msra.mxu1 %v756_v49  ;;  %v296_v49 = vld [vmem:[#allocation6 + $0x158] sm:$0xff]  ;;  %v826_v30 = vpack.c.bf16 %v455_v28, %v453_v27  ;;  %v452_v31 = vld [vmem:[#allocation8 + $0x20] sm:$0xff]  ;;  %v457_v33 = vld [vmem:[#allocation8 + $0x48] sm:$0xff] }
  0x57   :  { %759 = vmatprep.subr.bf16.mxu1 %v758_v53  ;;  %v798_v51 = vpack.c.bf16 %v296_v49, %v294_v48  ;;  %v295_v53 = vld [vmem:[#allocation6 + $0x150] sm:$0xff]  ;;  %v830_v36 = vpack.c.bf16 %v459_v34, %v457_v33  ;;  %v456_v37 = vld [vmem:[#allocation8 + $0x40] sm:$0xff]  ;;  %v122_v43 = vld [vmem:[%s1232_s3] sm:$0x3] }
  0x58   :  { %v800_v54 = vpack.c.bf16 %v295_v53, %v293_v52  ;;  %v205_v53 = vld [vmem:[%s1230_s1] sm:$0xff] }
  0x59   :  { %199 = vmatmul.mubr.f32.vlgmr.msra.gmra.mrb[0].mxu1 %v1165_v50  ;;  %v465_v28 = vld [vmem:[#allocation8 + $0x88] sm:$0xff] }
  0x5a   :  { %761 = vmatpush1.bf16.msra.mxu1 %v760_v56  ;;  %v300_v56 = vld [vmem:[#allocation6 + $0x178] sm:$0xff]  ;;  %v469_v34 = vld [vmem:[#allocation8 + $0xa8] sm:$0xff] }
  0x5b   :  { %763 = vmatprep.subr.bf16.mxu1 %v762_v59  ;;  %v802_v57 = vpack.c.bf16 %v300_v56, %v298_v55  ;;  %v299_v59 = vld [vmem:[#allocation6 + $0x170] sm:$0xff] }
  0x5c   :  { %v804_v60 = vpack.c.bf16 %v299_v59, %v297_v58 }
  0x5e   :  { %765 = vmatpush1.bf16.msra.mxu1 %v764_v62  ;;  %v304_v62 = vld [vmem:[#allocation6 + $0x198] sm:$0xff] }
  0x5f   :  { %767 = vmatprep.subr.bf16.mxu1 %v766_v2  ;;  %v806_v63 = vpack.c.bf16 %v304_v62, %v302_v61  ;;  %v303_v2 = vld [vmem:[#allocation6 + $0x190] sm:$0xff] }
  0x60   :  { %v808_v3 = vpack.c.bf16 %v303_v2, %v301_v1 }
  0x62   :  { %769 = vmatpush1.bf16.msra.mxu1 %v768_v5  ;;  %v308_v5 = vld [vmem:[#allocation6 + $0x1b8] sm:$0xff] }
  0x63   :  { %771 = vmatprep.subr.bf16.mxu1 %v770_v8  ;;  %v810_v6 = vpack.c.bf16 %v308_v5, %v306_v4  ;;  %v307_v8 = vld [vmem:[#allocation6 + $0x1b0] sm:$0xff] }
  0x64   :  { %v812_v9 = vpack.c.bf16 %v307_v8, %v305_v7 }
  0x66   :  { %773 = vmatpush1.bf16.msra.mxu1 %v772_v11  ;;  %v312_v11 = vld [vmem:[#allocation6 + $0x1d8] sm:$0xff] }
  0x67   :  { %775 = vmatprep.subr.bf16.mxu1 %v774_v14  ;;  %v814_v12 = vpack.c.bf16 %v312_v11, %v310_v10  ;;  %v311_v14 = vld [vmem:[#allocation6 + $0x1d0] sm:$0xff] }
  0x68   :  { %v816_v15 = vpack.c.bf16 %v311_v14, %v309_v13 }
  0x6a   :  { %777 = vmatpush1.bf16.msra.mxu1 %v776_v17  ;;  %v316_v17 = vld [vmem:[#allocation6 + $0x1f8] sm:$0xff] }
  0x6b   :  { %779 = vmatprep.subr.bf16.mxu1 %v778_v20  ;;  %v818_v19 = vpack.c.bf16 %v316_v17, %v314_v16  ;;  %v315_v20 = vld [vmem:[#allocation6 + $0x1f0] sm:$0xff]  ;;  %v723_v17 = vld [vmem:[%s1234_s5] ss:$0 sm:$0xff] }
  0x6c   :  { %v820_v21 = vpack.c.bf16 %v315_v20, %v313_v18 }
  0x6e   :  { %781 = vmatpush1.bf16.msra.mxu1 %v780_v23  ;;  %v451_v23 = vld [vmem:[#allocation8 + $0x18] sm:$0xff] }
  0x6f   :  { %783 = vmatprep.subr.bf16.mxu1 %v782_v26  ;;  %v822_v25 = vpack.c.bf16 %v451_v23, %v449_v22  ;;  %v450_v26 = vld [vmem:[#allocation8 + $0x10] sm:$0xff]  ;;  %v461_v22 = vld [vmem:[#allocation8 + $0x68] sm:$0xff]  ;;  %v463_v23 = vld [vmem:[#allocation8 + $0x78] sm:$0xff] }
  0x71   :  { %823 = vmatprep.subr.bf16.mxu0 %v822_v25  ;;  %v460_v25 = vld [vmem:[#allocation8 + $0x60] sm:$0xff] }
  0x72   :  { %785 = vmatpush1.bf16.msra.mxu1 %v784_v29  ;;  %v824_v29 = vpack.c.bf16 %v450_v26, %v448_v24  ;;  %v834_v24 = vpack.c.bf16 %v463_v23, %v461_v22  ;;  %v462_v26 = vld [vmem:[#allocation8 + $0x70] sm:$0xff]  ;;  %v501_v22 = vld [vmem:[#allocation8 + $0x1a8] sm:$0xff]  ;;  %v503_v23 = vld [vmem:[#allocation8 + $0x1b8] sm:$0xff] }
  0x73   :  { %787 = vmatprep.subr.bf16.mxu1 %v786_v32  ;;  %v454_v32 = vld [vmem:[#allocation8 + $0x30] sm:$0xff]  ;;  %v836_v27 = vpack.c.bf16 %v462_v26, %v460_v25  ;;  %v500_v25 = vld [vmem:[#allocation8 + $0x1a0] sm:$0xff] }
  0x74   :  { %825 = vmatpush1.bf16.msra.mxu0 %v824_v29  ;;  %v467_v29 = vld [vmem:[#allocation8 + $0x98] sm:$0xff]  ;;  %v502_v26 = vld [vmem:[#allocation8 + $0x1b0] sm:$0xff] }
  0x75   :  { %827 = vmatprep.subr.bf16.mxu0 %v826_v30  ;;  %v838_v30 = vpack.c.bf16 %v467_v29, %v465_v28  ;;  %v505_v28 = vld [vmem:[#allocation8 + $0x1c8] sm:$0xff]  ;;  %v507_v29 = vld [vmem:[#allocation8 + $0x1d8] sm:$0xff] }
  0x76   :  { %789 = vmatpush1.bf16.msra.mxu1 %v788_v35  ;;  %v828_v35 = vpack.c.bf16 %v454_v32, %v452_v31  ;;  %v464_v31 = vld [vmem:[#allocation8 + $0x80] sm:$0xff]  ;;  %v466_v32 = vld [vmem:[#allocation8 + $0x90] sm:$0xff] }
  0x77   :  { %791 = vmatprep.subr.bf16.mxu1 %v790_v38  ;;  %v458_v38 = vld [vmem:[#allocation8 + $0x50] sm:$0xff]  ;;  %v840_v33 = vpack.c.bf16 %v466_v32, %v464_v31  ;;  %v504_v31 = vld [vmem:[#allocation8 + $0x1c0] sm:$0xff] }
  0x78   :  { %829 = vmatpush1.bf16.msra.mxu0 %v828_v35  ;;  %v832_v39 = vpack.c.bf16 %v458_v38, %v456_v37  ;;  %v471_v35 = vld [vmem:[#allocation8 + $0xb8] sm:$0xff]  ;;  %v468_v37 = vld [vmem:[#allocation8 + $0xa0] sm:$0xff]  ;;  %v470_v38 = vld [vmem:[#allocation8 + $0xb0] sm:$0xff] }
  0x79   :  { %831 = vmatprep.subr.bf16.mxu0 %v830_v36  ;;  %v842_v36 = vpack.c.bf16 %v471_v35, %v469_v34  ;;  %v506_v32 = vld [vmem:[#allocation8 + $0x1d0] sm:$0xff]  ;;  %v509_v34 = vld [vmem:[#allocation8 + $0x1e8] sm:$0xff]  ;;  %v511_v35 = vld [vmem:[#allocation8 + $0x1f8] sm:$0xff] }
  0x7a   :  { %793 = vmatpush1.bf16.msra.mxu1 %v792_v41  ;;  %v125_v41 = vshrl.u32 %v124_v40, 7  ;;  %v473_v40 = vld [vmem:[#allocation8 + $0xc8] sm:$0xff] }
  0x7b   :  { %795 = vmatprep.subr.bf16.mxu1 %v794_v44 }
  0x7c   :  { %833 = vmatpush1.bf16.msra.mxu0 %v832_v39  ;;  %v1168_v42 = vsub.s32 1, %v125_v41  ;;  %v844_v39 = vpack.c.bf16 %v470_v38, %v468_v37  ;;  %v508_v37 = vld [vmem:[#allocation8 + $0x1e0] sm:$0xff]  ;;  %v510_v38 = vld [vmem:[#allocation8 + $0x1f0] sm:$0xff] }
  0x7d   :  { %835 = vmatprep.subr.bf16.mxu0 %v834_v24  ;;  %v874_v24 = vpack.c.bf16 %v503_v23, %v501_v22  ;;  %v540_v22 = vld [vmem:[#allocation8 + $0x2e0] sm:$0xff] }
  0x7e   :  { %797 = vmatpush1.bf16.msra.mxu1 %v796_v47  ;;  %v131_v44 = vrot.slane %v122_v43, %v1168_v42 }
  0x7f   :  { %799 = vmatprep.subr.bf16.mxu1 %v798_v51  ;;  %v1174_v51 = vsub.s32 0, %v125_v41  ;;  %v475_v41 = vld [vmem:[#allocation8 + $0xd8] sm:$0xff] }
  0x80   :  { %837 = vmatpush1.bf16.msra.mxu0 %v836_v27  ;;  %v876_v27 = vpack.c.bf16 %v502_v26, %v500_v25  ;;  %v317_v26 = vld [vmem:[%s1236_s7] sm:$0x3] }
  0x81   :  { %v127_v52 = vrot.slane %v122_v43, %v1174_v51  ;;  %839 = vmatprep.subr.bf16.mxu0 %v838_v30  ;;  %v846_v43 = vpack.c.bf16 %v475_v41, %v473_v40  ;;  %v878_v30 = vpack.c.bf16 %v507_v29, %v505_v28  ;;  %v513_v40 = vld [vmem:[#allocation8 + $0x208] sm:$0xff]  ;;  %v515_v41 = vld [vmem:[#allocation8 + $0x218] sm:$0xff] }
  0x82   :  { %801 = vmatpush1.bf16.msra.mxu1 %v800_v54 }
  0x83   :  { %803 = vmatprep.subr.bf16.mxu1 %v802_v57 }
  0x84   :  { %841 = vmatpush1.bf16.msra.mxu0 %v840_v33  ;;  %v880_v33 = vpack.c.bf16 %v506_v32, %v504_v31 }
  0x85   :  { %843 = vmatprep.subr.bf16.mxu0 %v842_v36  ;;  %v882_v36 = vpack.c.bf16 %v511_v35, %v509_v34  ;;  %v400_v34 = vld [vmem:[%s1230_s1 + $0x8] sm:$0xff] }
  0x86   :  { %805 = vmatpush1.bf16.msra.mxu1 %v804_v60 }
  0x87   :  { %807 = vmatprep.subr.bf16.mxu1 %v806_v63 }
  0x88   :  { %845 = vmatpush1.bf16.msra.mxu0 %v844_v39  ;;  %v884_v39 = vpack.c.bf16 %v510_v38, %v508_v37 }
  0x89   :  { %847 = vmatprep.subr.bf16.mxu0 %v846_v43  ;;  %v886_v43 = vpack.c.bf16 %v515_v41, %v513_v40 }
  0x8a   :  { %809 = vmatpush1.bf16.msra.mxu1 %v808_v3 }
  0x8b   :  { %811 = vmatprep.subr.bf16.mxu1 %v810_v6 }
  0x8e   :  { %813 = vmatpush1.bf16.msra.mxu1 %v812_v9 }
  0x8f   :  { %815 = vmatprep.subr.bf16.mxu1 %v814_v12 }
  0x92   :  { %817 = vmatpush1.bf16.msra.mxu1 %v816_v15  ;;  %v722_v15 = vld [vmem:[%s1233_s4] ss:$0 sm:$0xff] }
  0x93   :  { %819 = vmatprep.subr.bf16.mxu1 %v818_v19 }
  0x96   :  { %821 = vmatpush1.bf16.msra.mxu1 %v820_v21 }
 0x12c   :  { %v200_v45 = vpop.f32.mrb[0].mxu1 }
 0x12d   :  { %v202_v46 = vpop.f32.mrb[1].mxu1  ;;  %v201_v55 = vadd.f32 %v200_v45, %v127_v52  ;;  %v474_v45 = vld [vmem:[#allocation8 + $0xd0] sm:$0xff]  ;;  %v476_v52 = vld [vmem:[#allocation8 + $0xe0] sm:$0xff] }
 0x12e   :  { %v203_v47 = vadd.f32 %v202_v46, %v131_v44  ;;  %v472_v44 = vld [vmem:[#allocation8 + $0xc0] sm:$0xff] }
 0x12f   :  { %v848_v46 = vpack.c.bf16 %v474_v45, %v472_v44  ;;  %v512_v44 = vld [vmem:[#allocation8 + $0x200] sm:$0xff]  ;;  %v514_v45 = vld [vmem:[#allocation8 + $0x210] sm:$0xff] }
 0x130   :  { %v206_v48 = vmul.f32 0.5, %v203_v47  ;;  %v477_v47 = vld [vmem:[#allocation8 + $0xe8] sm:$0xff] }
 0x131   :  { %849 = vmatpush1.bf16.msra.mxu0 %v848_v46  ;;  %v888_v46 = vpack.c.bf16 %v514_v45, %v512_v44 }
 0x132   :  { %v207_v49 = vmul.f32 1.442695, %v206_v48  ;;  %v479_v48 = vld [vmem:[#allocation8 + $0xf8] sm:$0xff] }
 0x134   :  { %929 = vpow2.f32 %v207_v49  ;;  %v850_v49 = vpack.c.bf16 %v479_v48, %v477_v47  ;;  %v517_v47 = vld [vmem:[#allocation8 + $0x228] sm:$0xff]  ;;  %v519_v48 = vld [vmem:[#allocation8 + $0x238] sm:$0xff] }
 0x136   :  { %851 = vmatprep.subr.bf16.mxu0 %v850_v49  ;;  %v890_v49 = vpack.c.bf16 %v519_v48, %v517_v47 }
 0x13e   :  { %v930_v54 = vpop.eup %929 }
 0x13f   :  { %v209_v56 = vmul.f32 %v930_v54, %v205_v53  ;;  %v478_v53 = vld [vmem:[#allocation8 + $0xf0] sm:$0xff] }
 0x140   :  { %v852_v54 = vpack.c.bf16 %v478_v53, %v476_v52  ;;  %v516_v52 = vld [vmem:[#allocation8 + $0x220] sm:$0xff]  ;;  %v518_v53 = vld [vmem:[#allocation8 + $0x230] sm:$0xff] }
 0x141   :  { %v210_v57 = vadd.f32 %v209_v56, %v201_v55  ;;  %v481_v55 = vld [vmem:[#allocation8 + $0x108] sm:$0xff]  ;;  %v483_v56 = vld [vmem:[#allocation8 + $0x118] sm:$0xff] }
 0x142   :  { %853 = vmatpush1.bf16.msra.mxu0 %v852_v54  ;;  %v892_v54 = vpack.c.bf16 %v518_v53, %v516_v52 }
 0x143   :  { %v211_v58 = vsel %vm87_vm0, %v210_v57, 0.0 }
 0x144   :  { %v212_v59 = vrot.slane %v211_v58, 4 }
 0x146   :  { %v213_v60 = vadd.f32 %v212_v59, %v211_v58  ;;  %v480_v58 = vld [vmem:[#allocation8 + $0x100] sm:$0xff]  ;;  %v482_v59 = vld [vmem:[#allocation8 + $0x110] sm:$0xff] }
 0x148   :  { %v214_v61 = vrot.slane %v213_v60, 2 }
 0x14a   :  { %v215_v62 = vadd.f32 %v214_v61, %v213_v60  ;;  %v856_v60 = vpack.c.bf16 %v482_v59, %v480_v58  ;;  %v485_v61 = vld [vmem:[#allocation8 + $0x128] sm:$0xff]  ;;  %v520_v58 = vld [vmem:[#allocation8 + $0x240] sm:$0xff]  ;;  %v522_v59 = vld [vmem:[#allocation8 + $0x250] sm:$0xff] }
 0x14c   :  { %v216_v63 = vrot.slane %v215_v62, 1 }
 0x14e   :  { %v217_v1 = vadd.f32 %v216_v63, %v215_v62  ;;  %v487_v62 = vld [vmem:[#allocation8 + $0x138] sm:$0xff] }
 0x14f   :  { %v858_v63 = vpack.c.bf16 %v487_v62, %v485_v61  ;;  %v527_v61 = vld [vmem:[#allocation8 + $0x278] sm:$0xff] }
 0x150   :  { %v219_v2 = vmul.f32 0.125, %v217_v1  ;;  %v484_v1 = vld [vmem:[#allocation8 + $0x120] sm:$0xff] }
 0x152   :  { %v220_v3 = vsub.f32 %v210_v57, %v219_v2  ;;  %v854_v57 = vpack.c.bf16 %v483_v56, %v481_v55  ;;  %v486_v2 = vld [vmem:[#allocation8 + $0x130] sm:$0xff]  ;;  %v521_v55 = vld [vmem:[#allocation8 + $0x248] sm:$0xff]  ;;  %v523_v56 = vld [vmem:[#allocation8 + $0x258] sm:$0xff] }
 0x154   :  { %v221_v4 = vmul.f32 %v220_v3, %v220_v3  ;;  %855 = vmatprep.subr.bf16.mxu0 %v854_v57  ;;  %v894_v57 = vpack.c.bf16 %v523_v56, %v521_v55 }
 0x155   :  { %857 = vmatpush1.bf16.msra.mxu0 %v856_v60  ;;  %v896_v60 = vpack.c.bf16 %v522_v59, %v520_v58 }
 0x156   :  { %v222_v5 = vsel %vm87_vm0, %v221_v4, 0.0  ;;  %859 = vmatprep.subr.bf16.mxu0 %v858_v63  ;;  %v489_v4 = vld [vmem:[#allocation8 + $0x148] sm:$0xff]  ;;  %v524_v63 = vld [vmem:[#allocation8 + $0x260] sm:$0xff] }
 0x157   :  { %v223_v6 = vrot.slane %v222_v5, 4 }
 0x159   :  { %v224_v7 = vadd.f32 %v223_v6, %v222_v5  ;;  %v491_v5 = vld [vmem:[#allocation8 + $0x158] sm:$0xff] }
 0x15a   :  { %v862_v6 = vpack.c.bf16 %v491_v5, %v489_v4  ;;  %v528_v5 = vld [vmem:[#allocation8 + $0x280] sm:$0xff] }
 0x15b   :  { %v225_v8 = vrot.slane %v224_v7, 2 }
 0x15d   :  { %v226_v9 = vadd.f32 %v225_v8, %v224_v7  ;;  %v488_v7 = vld [vmem:[#allocation8 + $0x140] sm:$0xff]  ;;  %v490_v8 = vld [vmem:[#allocation8 + $0x150] sm:$0xff] }
 0x15f   :  { %v227_v10 = vrot.slane %v226_v9, 1 }
 0x161   :  { %v228_v11 = vadd.f32 %v227_v10, %v226_v9  ;;  %v864_v9 = vpack.c.bf16 %v490_v8, %v488_v7  ;;  %v493_v10 = vld [vmem:[#allocation8 + $0x168] sm:$0xff] }
 0x162   :  { %v533_v8 = vld [vmem:[#allocation8 + $0x2a8] sm:$0xff] }
 0x163   :  { %v229_v12 = vmul.f32 0.125, %v228_v11  ;;  %v495_v11 = vld [vmem:[#allocation8 + $0x178] sm:$0xff] }
 0x165   :  { %v231_v13 = vadd.f32 1e-05, %v229_v12  ;;  %v866_v12 = vpack.c.bf16 %v495_v11, %v493_v10  ;;  %v532_v11 = vld [vmem:[#allocation8 + $0x2a0] sm:$0xff] }
 0x167   :  { %931 = vrsqrt.f32 %v231_v13  ;;  %v492_v13 = vld [vmem:[#allocation8 + $0x160] sm:$0xff] }
 0x171   :  { %v932_v14 = vpop.eup %931 }
 0x172   :  { %v233_v16 = vmul.f32 %v932_v14, %v220_v3  ;;  %v860_v3 = vpack.c.bf16 %v486_v2, %v484_v1  ;;  %v494_v14 = vld [vmem:[#allocation8 + $0x170] sm:$0xff]  ;;  %v529_v2 = vld [vmem:[#allocation8 + $0x288] sm:$0xff] }
 0x173   :  { %v526_v1 = vld [vmem:[#allocation8 + $0x270] sm:$0xff] }
 0x174   :  { %v240_v18 = vmul.f32 %v722_v15, %v233_v16  ;;  %861 = vmatpush1.bf16.msra.mxu0 %v860_v3  ;;  %v868_v15 = vpack.c.bf16 %v494_v14, %v492_v13  ;;  %v497_v16 = vld [vmem:[#allocation8 + $0x188] sm:$0xff]  ;;  %v531_v3 = vld [vmem:[#allocation8 + $0x298] sm:$0xff] }
 0x175   :  { %863 = vmatprep.subr.bf16.mxu0 %v862_v6  ;;  %v902_v4 = vpack.c.bf16 %v531_v3, %v529_v2  ;;  %v530_v6 = vld [vmem:[#allocation8 + $0x290] sm:$0xff]  ;;  %v537_v14 = vld [vmem:[#allocation8 + $0x2c8] sm:$0xff] }
 0x176   :  { %v248_v19 = vadd.f32 %v723_v17, %v240_v18  ;;  %v499_v17 = vld [vmem:[#allocation8 + $0x198] sm:$0xff]  ;;  %v904_v7 = vpack.c.bf16 %v530_v6, %v528_v5 }
 0x177   :  { %v870_v18 = vpack.c.bf16 %v499_v17, %v497_v16  ;;  %v536_v17 = vld [vmem:[#allocation8 + $0x2c0] sm:$0xff] }
 0x178   :  { %v249_v20 = vmax.f32 %v248_v19, 0.0  ;;  %865 = vmatpush1.bf16.msra.mxu0 %v864_v9  ;;  %v496_v19 = vld [vmem:[#allocation8 + $0x180] sm:$0xff]  ;;  %v535_v9 = vld [vmem:[#allocation8 + $0x2b8] sm:$0xff] }
 0x179   :  { %867 = vmatprep.subr.bf16.mxu0 %v866_v12  ;;  %v906_v10 = vpack.c.bf16 %v535_v9, %v533_v8  ;;  %v534_v12 = vld [vmem:[#allocation8 + $0x2b0] sm:$0xff] }
 0x17a   :  { %250 = vst.msk [vmem:[#allocation2 + $0x8] sm:$0xff] %vm87_vm0, %v249_v20  ;;  %v498_v20 = vld [vmem:[#allocation8 + $0x190] sm:$0xff]  ;;  %v908_v13 = vpack.c.bf16 %v534_v12, %v532_v11  ;;  %v698_v12 = vld [vmem:[%s1230_s1 + $0x10] sm:$0xff] }
 0x17c   :  { %869 = vmatpush1.bf16.msra.mxu0 %v868_v15  ;;  %v539_v15 = vld [vmem:[#allocation8 + $0x2d8] sm:$0xff] }
 0x17d   :  { %871 = vmatprep.subr.bf16.mxu0 %v870_v18  ;;  %v910_v16 = vpack.c.bf16 %v539_v15, %v537_v14  ;;  %v538_v18 = vld [vmem:[#allocation8 + $0x2d0] sm:$0xff] }
 0x181   :  { %v252_v21 = vld [vmem:[#allocation2 + $0x8] sm:$0xff] }
 0x182   :  { %393 = vmatprep.mubr.f32.mxu1 %v252_v21  ;;  %620 = vmatprep.mubr.f32.mxu0 %v252_v21  ;;  %v872_v21 = vpack.c.bf16 %v498_v20, %v496_v19  ;;  %v912_v19 = vpack.c.bf16 %v538_v18, %v536_v17  ;;  %v541_v20 = vld [vmem:[#allocation8 + $0x2e8] sm:$0xff] }
 0x183   :  { %394 = vmatmul.mubr.f32.vlgmr.msra.gmra.mrb[2].mxu1 %v1165_v50 }
 0x184   :  { %873 = vmatpush1.bf16.msra.mxu0 %v872_v21  ;;  %v543_v21 = vld [vmem:[#allocation8 + $0x2f8] sm:$0xff] }
 0x185   :  { %875 = vmatprep.subr.bf16.mxu0 %v874_v24  ;;  %v914_v23 = vpack.c.bf16 %v543_v21, %v541_v20  ;;  %v542_v24 = vld [vmem:[#allocation8 + $0x2f0] sm:$0xff] }
 0x186   :  { %v916_v25 = vpack.c.bf16 %v542_v24, %v540_v22 }
 0x188   :  { %877 = vmatpush1.bf16.msra.mxu0 %v876_v27  ;;  %v326_v27 = vrot.slane %v317_v26, %v1168_v42 }
 0x189   :  { %879 = vmatprep.subr.bf16.mxu0 %v878_v30 }
 0x18c   :  { %881 = vmatpush1.bf16.msra.mxu0 %v880_v33  ;;  %v322_v33 = vrot.slane %v317_v26, %v1174_v51 }
 0x18d   :  { %883 = vmatprep.subr.bf16.mxu0 %v882_v36 }
 0x190   :  { %885 = vmatpush1.bf16.msra.mxu0 %v884_v39 }
 0x191   :  { %887 = vmatprep.subr.bf16.mxu0 %v886_v43 }
 0x193   :  { %621 = vmatmul.mubr.f32.vlgmr.msra.gmra.mrb[0].mxu0 %v1165_v50  ;;  %v525_v50 = vld [vmem:[#allocation8 + $0x268] sm:$0xff] }
 0x194   :  { %889 = vmatpush1.bf16.msra.mxu0 %v888_v46  ;;  %691 = vmatprep.mubr.f32.mxu0 %v1038_v0  ;;  %v898_v62 = vpack.c.bf16 %v527_v61, %v525_v50  ;;  %v900_v0 = vpack.c.bf16 %v526_v1, %v524_v63  ;;  %v724_v61 = vld [vmem:[%s1237_s8] ss:$0 sm:$0xff] }
 0x195   :  { %891 = vmatprep.subr.bf16.mxu0 %v890_v49  ;;  %v725_v63 = vld [vmem:[%s1238_s9] ss:$0 sm:$0xff] }
 0x198   :  { %893 = vmatpush1.bf16.msra.mxu0 %v892_v54 }
 0x199   :  { %895 = vmatprep.subr.bf16.mxu0 %v894_v57 }
 0x19c   :  { %897 = vmatpush1.bf16.msra.mxu0 %v896_v60 }
 0x19d   :  { %899 = vmatprep.subr.bf16.mxu0 %v898_v62 }
 0x1a0   :  { %901 = vmatpush1.bf16.msra.mxu0 %v900_v0 }
 0x1a1   :  { %903 = vmatprep.subr.bf16.mxu0 %v902_v4  ;;  %v544_v4 = vld [vmem:[%s1240_s11] sm:$0x3]  ;;  %s1005_s11 = scalar_lea.vmem %s713_s20, 128 }
 0x1a2   :  { %v553_v5 = vrot.slane %v544_v4, %v1168_v42  ;;  %v549_v11 = vrot.slane %v544_v4, %v1174_v51  ;;  %p1006_p10 = scmp.ne.s32.totalorder %s713_s20, %s1005_s11  ;;  %p1011_p12 = scmp.lt.s32.totalorder %s1005_s11, %s1005_s11 }
 0x1a4   :  { %905 = vmatpush1.bf16.msra.mxu0 %v904_v7  ;;  %p1012_p13 = por %p1011_p12, %p1010_p11 }
 0x1a5   :  { %907 = vmatprep.subr.bf16.mxu0 %v906_v10 }
 0x1a6   :  { %p1013_p0 = pnand %p1012_p13, %p1006_p10 }
 0x1a8   :  { %909 = vmatpush1.bf16.msra.mxu0 %v908_v13 }
 0x1a9   :  { %911 = vmatprep.subr.bf16.mxu0 %v910_v16 }
 0x1ac   :  { %913 = vmatpush1.bf16.msra.mxu0 %v912_v19 }
 0x1ad   :  { %915 = vmatprep.subr.bf16.mxu0 %v914_v23 }
 0x1b0   :  { %917 = vmatpush1.bf16.msra.mxu0 %v916_v25 }
 0x256   :  { %v395_v28 = vpop.f32.mrb[2].mxu1 }
 0x257   :  { %v397_v29 = vpop.f32.mrb[3].mxu1  ;;  %v396_v36 = vadd.f32 %v395_v28, %v322_v33 }
 0x258   :  { %v398_v30 = vadd.f32 %v397_v29, %v326_v27 }
 0x25a   :  { %v401_v31 = vmul.f32 0.5, %v398_v30 }
 0x25c   :  { %v402_v32 = vmul.f32 1.442695, %v401_v31 }
 0x25e   :  { %933 = vpow2.f32 %v402_v32 }
 0x268   :  { %v934_v35 = vpop.eup %933 }
 0x269   :  { %v404_v37 = vmul.f32 %v934_v35, %v400_v34 }
 0x26b   :  { %v405_v38 = vadd.f32 %v404_v37, %v396_v36 }
 0x26d   :  { %v406_v39 = vsel %vm87_vm0, %v405_v38, 0.0 }
 0x26e   :  { %v407_v40 = vrot.slane %v406_v39, 4 }
 0x270   :  { %v408_v41 = vadd.f32 %v407_v40, %v406_v39 }
 0x272   :  { %v409_v43 = vrot.slane %v408_v41, 2 }
 0x274   :  { %v410_v44 = vadd.f32 %v409_v43, %v408_v41 }
 0x276   :  { %v411_v45 = vrot.slane %v410_v44, 1 }
 0x278   :  { %v412_v46 = vadd.f32 %v411_v45, %v410_v44 }
 0x27a   :  { %v413_v47 = vmul.f32 0.125, %v412_v46 }
 0x27c   :  { %v414_v48 = vsub.f32 %v405_v38, %v413_v47 }
 0x27e   :  { %v415_v49 = vmul.f32 %v414_v48, %v414_v48 }
 0x280   :  { %v416_v52 = vsel %vm87_vm0, %v415_v49, 0.0 }
 0x281   :  { %v417_v53 = vrot.slane %v416_v52, 4 }
 0x283   :  { %v418_v54 = vadd.f32 %v417_v53, %v416_v52 }
 0x285   :  { %v419_v55 = vrot.slane %v418_v54, 2 }
 0x287   :  { %v420_v56 = vadd.f32 %v419_v55, %v418_v54 }
 0x289   :  { %v421_v57 = vrot.slane %v420_v56, 1 }
 0x28b   :  { %v422_v58 = vadd.f32 %v421_v57, %v420_v56 }
 0x28d   :  { %v423_v59 = vmul.f32 0.125, %v422_v58 }
 0x28f   :  { %v425_v60 = vadd.f32 1e-05, %v423_v59 }
 0x291   :  { %935 = vrsqrt.f32 %v425_v60 }
 0x29b   :  { %v936_v50 = vpop.eup %935 }
 0x29c   :  { %v427_v62 = vmul.f32 %v936_v50, %v414_v48 }
 0x29e   :  { %v434_v1 = vmul.f32 %v724_v61, %v427_v62 }
 0x2a0   :  { %v442_v0 = vadd.f32 %v725_v63, %v434_v1 }
 0x2a2   :  { %v443_v2 = vmax.f32 %v442_v0, 0.0 }
 0x2a4   :  { %444 = vst.msk [vmem:[#allocation2 + $0x10] sm:$0xff] %vm87_vm0, %v443_v2 }
 0x2ab   :  { %v447_v3 = vld [vmem:[#allocation2 + $0x10] sm:$0xff] }
 0x2ac   :  { %692 = vmatmul.mubr.f32.vlgmr.msra.gmra.mrb[0].mxu0 %v447_v3 }
 0x37f   :  { %v693_v6 = vpop.f32.mrb[0].mxu0 }
 0x380   :  { %v695_v7 = vpop.f32.mrb[1].mxu0  ;;  %v918_v14 = vadd.f32 %v693_v6, %v549_v11 }
 0x381   :  { %v919_v8 = vadd.f32 %v695_v7, %v553_v5 }
 0x383   :  { %v699_v9 = vmul.f32 0.5, %v919_v8 }
 0x385   :  { %v700_v10 = vmul.f32 1.442695, %v699_v9 }
 0x387   :  { %937 = vpow2.f32 %v700_v10 }
 0x391   :  { %v938_v13 = vpop.eup %937 }
 0x392   :  { %v702_v15 = vmul.f32 %v938_v13, %v698_v12 }
 0x394   :  { %v703_v16 = vadd.f32 %v918_v14, %v702_v15 }
 0x396   :  { %705 = vst.msk [vmem:[#allocation9] sm:$0xff] %vm704_vm1, %v703_v16 }
 0x397   :  { %1016 = shalt.err (!%p1013_p0)
}
 0x398   :  { %s1017_s1 = scalar_lea.hbm %s1241_s12, 128 }
 0x399   :  { %p1018_p1 = scmp.ne.s32.totalorder %s1241_s12, %s1017_s1  ;;  %p1021_p2 = scmp.lt.u32.totalorder %s1017_s1, %s1241_s12 }
 0x39b   :  { %p1023_p3 = pnand %p1021_p2, %p1018_p1 }
 0x39d   :  { %1026 = shalt.err (!%p1023_p3)
}
 0x39e   :  { %715 = dma.vmem_to_hbm [thread:$0]  %s713_s20, 128, %s1241_s12, [#allocation5]  }
 0x39f   :  { %1031 = dma.done.wait [#allocation5], 128  }
 0x3a0   :  { %1032 = vsyncadd [#allocation5], 4294967168 }
 0x3a1   :  { %719 = vsyncpa [#allocation4], 1 }
 0x3a2   :  { %720 = vsyncpa [#allocation7], 1 }
 0x3a3   :  { %721 = vsyncpa [#allocation5], 1 }

</bundles_post_ra>
